<compile_context>
chip_gen: v6e
topology: v6e:2x2x1
jax: 0.10.0
libtpu: 0.0.40
codegen_flags: <defaults>
</compile_context>

<pallas_src>
import math
import functools

import jax
import jax.numpy as jnp
import numpy as np
from jax import lax
from jax.experimental import pallas as pl
from jax.experimental.pallas import tpu as pltpu


# -------------------------------------------------------------------------
# Tile pickers (collapse to full dims at toy sizes; 8/128-aligned otherwise)
# -------------------------------------------------------------------------

def _pick_tile(full, target, align):
    """Largest tile <= target that divides `full` and is `align`-aligned; else the full dim."""
    if full <= target:
        return full
    t = (min(target, full) // align) * align
    while t >= align:
        if full % t == 0:
            return t
        t -= align
    return full  # untiled along this dim (always a legal BlockSpec)


def _pick_head_block(bh, hd, target):
    """Heads per grid step: hb*hd must be a multiple of 128 lanes (or the full output width)."""
    for hb in range(min(target, bh), 0, -1):
        if bh % hb == 0 and ((hb * hd) % 128 == 0 or hb == bh):
            return hb
    return bh


# -------------------------------------------------------------------------
# Tiled Linear:  y = x @ W.T + b   (PyTorch Linear weight layout [N, K])
# -------------------------------------------------------------------------

def _linear_kernel(x_ref, w_ref, b_ref, o_ref, acc_ref):
    # x: [tm, tk], w: [tn, tk], b: [1, tn] -> o: [tm, tn]
    @pl.when(pl.program_id(2) == 0)
    def _init():
        acc_ref[...] = jnp.zeros_like(acc_ref)

    acc_ref[...] += lax.dot_general(
        x_ref[...], w_ref[...],
        dimension_numbers=(((1,), (1,)), ((), ())),   # contract K dims, no batch
        preferred_element_type=jnp.float32,
    )

    @pl.when(pl.program_id(2) == pl.num_programs(2) - 1)
    def _finalize():
        o_ref[...] = (acc_ref[...] + b_ref[...]).astype(o_ref.dtype)


def linear(x, w, b, *, tm_target=256, tn_target=256, tk_target=512):
    """x: [M, K], w: [N, K], b: [N] -> [M, N]."""
    M, K = x.shape
    N, K2 = w.shape
    assert K == K2
    tm = _pick_tile(M, tm_target, 8)
    tn = _pick_tile(N, tn_target, 128)
    tk = _pick_tile(K, tk_target, 128)
    grid = (M // tm, N // tn, K // tk)
    return pl.pallas_call(
        _linear_kernel,
        out_shape=jax.ShapeDtypeStruct((M, N), x.dtype),
        grid_spec=pltpu.PrefetchScalarGridSpec(
            num_scalar_prefetch=0,
            grid=grid,
            in_specs=[
                pl.BlockSpec((tm, tk), lambda i, j, k: (i, k)),
                pl.BlockSpec((tn, tk), lambda i, j, k: (j, k)),
                pl.BlockSpec((1, tn), lambda i, j, k: (0, j)),
            ],
            out_specs=pl.BlockSpec((tm, tn), lambda i, j, k: (i, j)),
            scratch_shapes=[pltpu.VMEM((tm, tn), jnp.float32)],
        ),
        compiler_params=pltpu.CompilerParams(
            dimension_semantics=("parallel", "parallel", "arbitrary")),
    )(x, w, b.reshape(1, N))


# -------------------------------------------------------------------------
# Flash-style CoreAttention: BMM1 -> (causal mask) -> online softmax -> BMM2
# -------------------------------------------------------------------------

def _flash_attn_kernel(q_ref, k_ref, v_ref, o_ref, m_sc, l_sc, acc_sc,
                       *, inv_norm_factor, causal, tq, tk, hd, hb):
    qi = pl.program_id(1)
    ki = pl.program_id(2)

    @pl.when(ki == 0)
    def _init():
        m_sc[...] = jnp.full_like(m_sc, -jnp.inf)
        l_sc[...] = jnp.zeros_like(l_sc)
        acc_sc[...] = jnp.zeros_like(acc_sc)

    def _attend():
        q = q_ref[...]                     # [hb, tq, hd]  native dtype -> MXU
        k = k_ref[...]                     # [hb, tk, hd]
        v = v_ref[...]                     # [hb, tk, hd]
        # BMM1 (scaled): f32 accumulation on the MXU.
        s = jnp.einsum("hqd,hkd->hqk", q, k,
                       preferred_element_type=jnp.float32) * inv_norm_factor
        if causal:
            # TE attention_mask_func semantics: masked positions filled with -10000.0
            row = qi * tq + lax.broadcasted_iota(jnp.int32, (tq, tk), 0)
            col = ki * tk + lax.broadcasted_iota(jnp.int32, (tq, tk), 1)
            s = jnp.where((col <= row)[None, :, :], s, jnp.float32(-10000.0))
        m_prev = m_sc[...]                                      # [hb, tq, 1]
        m_new = jnp.maximum(m_prev, jnp.max(s, axis=-1, keepdims=True))
        alpha = jnp.exp(m_prev - m_new)
        p = jnp.exp(s - m_new)
        l_sc[...] = alpha * l_sc[...] + jnp.sum(p, axis=-1, keepdims=True)
        acc_sc[...] = alpha * acc_sc[...] + jnp.einsum(
            "hqk,hkd->hqd", p.astype(v.dtype), v,
            preferred_element_type=jnp.float32)
        m_sc[...] = m_new

    if causal:
        # Skip kv tiles that lie entirely above the causal diagonal (~2x FLOP savings).
        pl.when(ki * tk <= qi * tq + (tq - 1))(_attend)
    else:
        _attend()

    @pl.when(ki == pl.num_programs(2) - 1)
    def _finalize():
        # TODO(synk): pl.reciprocal(approx=True) is cheaper on v5e but loosens tolerance.
        ctx = acc_sc[...] * pl.reciprocal(l_sc[...], approx=False)     # [hb, tq, hd]
        # Write the block directly in [S, B*H] layout: lane-dense (hb*hd wide) HBM stores.
        for h in range(hb):                                            # static unroll, hb small
            o_ref[:, h * hd:(h + 1) * hd] = ctx[h].astype(o_ref.dtype)


def core_attention(q, k, v, *, norm_factor, causal,
                   tq_target=256, tk_target=256, head_block_target=8):
    """q, k, v: [B*H, S, hd] (b-major, then head) -> context in [S, B*H*hd] layout."""
    BH, S, hd = q.shape
    tq = _pick_tile(S, tq_target, 8)
    tk = _pick_tile(S, tk_target, 8)
    hb = _pick_head_block(BH, hd, head_block_target)
    grid = (BH // hb, S // tq, S // tk)

    def q_map(ib, qi, ki):
        return (ib, qi, 0)

    def kv_map(ib, qi, ki):
        if causal:
            # Clamp to the last kv tile that intersects the causal region for this q tile,
            # so fully-masked tiles are never freshly DMA'd.
            ki = jnp.minimum(ki, (qi * tq + (tq - 1)) // tk)
        return (ib, ki, 0)

    def out_map(ib, qi, ki):
        return (qi, ib)

    kernel = functools.partial(
        _flash_attn_kernel,
        inv_norm_factor=1.0 / norm_factor, causal=causal,
        tq=tq, tk=tk, hd=hd, hb=hb)

    return pl.pallas_call(
        kernel,
        out_shape=jax.ShapeDtypeStruct((S, BH * hd), q.dtype),
        grid_spec=pltpu.PrefetchScalarGridSpec(
            num_scalar_prefetch=0,
            grid=grid,
            in_specs=[
                pl.BlockSpec((hb, tq, hd), q_map),
                pl.BlockSpec((hb, tk, hd), kv_map),
                pl.BlockSpec((hb, tk, hd), kv_map),
            ],
            out_specs=pl.BlockSpec((tq, hb * hd), out_map),
            scratch_shapes=[
                pltpu.VMEM((hb, tq, 1), jnp.float32),   # running max m
                pltpu.VMEM((hb, tq, 1), jnp.float32),   # running sum l
                pltpu.VMEM((hb, tq, hd), jnp.float32),  # output accumulator
            ],
        ),
        compiler_params=pltpu.CompilerParams(
            dimension_semantics=("parallel", "parallel", "arbitrary")),
    )(q, k, v)


# -------------------------------------------------------------------------
# MultiHeadAttention (JAX/Pallas)
# -------------------------------------------------------------------------

class MultiHeadAttentionPallas:
    def __init__(self, hidden_size, num_attention_heads, kv_channels,
                 attention_dropout=0.0, layer_number=None, attn_mask_type="causal",
                 params_dtype=jnp.float32, seed=0,
                 attn_tq=256, attn_tk=256, attn_head_block=8):
        assert attn_mask_type in ("causal", "padding")
        self.hidden_size = hidden_size
        self.num_heads = num_attention_heads
        self.kv_channels = kv_channels
        self.attn_mask_type = attn_mask_type
        self.params_dtype = params_dtype
        self.attn_tq = attn_tq
        self.attn_tk = attn_tk
        self.attn_head_block = attn_head_block

        # norm_factor as in CoreAttention (layer_number=None disables qk-layer-scaling)
        self.norm_factor = math.sqrt(kv_channels)

        # Deterministic parameter init (shapes follow the PyTorch module):
        #   qkv weight: [3*hidden, hidden], qkv bias: [3*hidden] (zeroed in set_qkv_params)
        #   proj weight: [hidden, hidden], proj has bias=False / return_bias=True
        key = jax.random.PRNGKey(seed)
        k_qkv, k_proj = jax.random.split(key)
        scale = 1.0 / math.sqrt(hidden_size)
        self.qkv_weight = (scale * jax.random.normal(
            k_qkv, (3 * hidden_size, hidden_size))).astype(params_dtype)
        self.qkv_bias = jnp.zeros((3 * hidden_size,), params_dtype)
        self.proj_weight = (scale * jax.random.normal(
            k_proj, (hidden_size, hidden_size))).astype(params_dtype)
        self._proj_zero_bias = jnp.zeros((hidden_size,), params_dtype)

    def __call__(self, hidden_states, attention_mask=None):
        """hidden_states: [seq, batch, hidden] -> (attention_output [seq, batch, hidden], attention_bias [hidden])."""
        S, B, H = hidden_states.shape
        nh, hd = self.num_heads, self.kv_channels

        # --- QKV projection (tiled Pallas matmul + bias) ---
        x2d = hidden_states.reshape(S * B, H)
        mixed = linear(x2d, self.qkv_weight, self.qkv_bias)             # [S*B, 3H]
        mixed = mixed.reshape(S, B, nh, 3 * hd)
        q, k, v = jnp.split(mixed, 3, axis=-1)                          # each [S, B, nh, hd]

        # [S, B, nh, hd] -> [B*nh, S, hd]  (b-major, then head)
        # TODO(synk): folding this input permute into the attention BlockSpec would need an
        # in-kernel relayout of q/k/v; kept as an XLA transpose for robustness.
        def to_bh(t):
            return jnp.transpose(t, (1, 2, 0, 3)).reshape(B * nh, S, hd)

        # --- CoreAttention (flash-style tiled online softmax) ---
        # Output comes back already in [S, B*H] layout (no wrapper transpose needed).
        ctx = core_attention(to_bh(q), to_bh(k), to_bh(v),
                             norm_factor=self.norm_factor,
                             causal=(self.attn_mask_type == "causal"),
                             tq_target=self.attn_tq, tk_target=self.attn_tk,
                             head_block_target=self.attn_head_block)    # [S, B*H]
        # TODO(synk): attn_mask_type='padding' (user attention_mask) not applied.

        # --- Output projection (tiled Pallas matmul; bias returned, not added) ---
        out = linear(ctx.reshape(S * B, H), self.proj_weight,
                     self._proj_zero_bias).reshape(S, B, H)
        attention_bias = jnp.zeros((H,), self.params_dtype)  # TE returns the (empty) bias alongside
        return out, attention_bias


# -------------------------------------------------------------------------
# Pure-JAX reference (for correctness check)
# -------------------------------------------------------------------------

def reference_forward(mha, hidden_states):
    S, B, H = hidden_states.shape
    nh, hd = mha.num_heads, mha.kv_channels
    x2d = hidden_states.reshape(S * B, H).astype(jnp.float32)
    mixed = x2d @ mha.qkv_weight.T.astype(jnp.float32) + mha.qkv_bias
    mixed = mixed.reshape(S, B, nh, 3 * hd)
    q, k, v = jnp.split(mixed, 3, axis=-1)
    qb = jnp.transpose(q, (1, 2, 0, 3))   # [B, nh, S, hd]
    kb = jnp.transpose(k, (1, 2, 0, 3))
    vb = jnp.transpose(v, (1, 2, 0, 3))
    scores = jnp.einsum("bhqd,bhkd->bhqk", qb, kb) / mha.norm_factor
    row = jnp.arange(S)[:, None]
    col = jnp.arange(S)[None, :]
    scores = jnp.where(col <= row, scores, -10000.0)
    probs = jax.nn.softmax(scores, axis=-1)
    ctx = jnp.einsum("bhqk,bhkd->bhqd", probs, vb)        # [B, nh, S, hd]
    ctx = jnp.transpose(ctx, (2, 0, 1, 3)).reshape(S, B, nh * hd)
    out = ctx.reshape(S * B, H) @ mha.proj_weight.T.astype(jnp.float32)
    return out.reshape(S, B, H)


# -------------------------------------------------------------------------

if __name__ == "__main__":
    def check(seq, batch, num_heads, kv_channels, seed, **mha_kwargs):
        hidden = num_heads * kv_channels
        mha = MultiHeadAttentionPallas(
            hidden_size=hidden, num_attention_heads=num_heads, kv_channels=kv_channels,
            attention_dropout=0.0, layer_number=None, attn_mask_type="causal",
            seed=seed, **mha_kwargs)
        key = jax.random.PRNGKey(0)
        hidden_states = jax.random.normal(key, (seq, batch, hidden), dtype=jnp.float32)
        attn_out, attn_bias = mha(hidden_states, None)   # mask ignored for causal (TE semantics)
        attn_out = jax.block_until_ready(attn_out)
        jax.block_until_ready(attn_bias)
        ref = reference_forward(mha, hidden_states)
        np.testing.assert_allclose(np.asarray(attn_out), np.asarray(ref), atol=1e-4, rtol=1e-4)
        assert attn_out.shape == (seq, batch, hidden)
        assert attn_bias.shape == (hidden,)

    # Small single-tile case consistent with the module's forward conventions.
    check(seq=8, batch=2, num_heads=4, kv_channels=8, seed=0)
    # Slightly larger case forcing the multi-tile causal flash path (online softmax across
    # several kv tiles, causal tile skipping, multiple q tiles).
    check(seq=32, batch=2, num_heads=4, kv_channels=8, seed=1, attn_tq=8, attn_tk=8)

    print("KERNEL_OK")
</pallas_src>

<mosaic_0001>
module attributes {stable_mosaic.version = 11 : i64} {
  func.func @_linear_kernel(%arg0: i32, %arg1: i32, %arg2: i32, %arg3: memref<16x32xf32, #tpu.memory_space<vmem>>, %arg4: memref<96x32xf32, #tpu.memory_space<vmem>>, %arg5: memref<1x96xf32, #tpu.memory_space<vmem>>, %arg6: memref<16x96xf32, #tpu.memory_space<vmem>>, %arg7: memref<16x96xf32, #tpu.memory_space<vmem>>) attributes {dimension_semantics = [#tpu.dimension_semantics<parallel>, #tpu.dimension_semantics<parallel>, #tpu.dimension_semantics<arbitrary>], iteration_bounds = array<i64: 1, 1, 1>, scalar_prefetch = 0 : i64, scratch_operands = 1 : i64, tpu.core_type = #tpu.core_type<tc>, window_params = [{transform_indices = @transform_0, window_bounds = array<i64: 16, 32>}, {transform_indices = @transform_1, window_bounds = array<i64: 96, 32>}, {transform_indices = @transform_2, window_bounds = array<i64: 1, 96>}, {transform_indices = @transform_3, window_bounds = array<i64: 16, 96>}]} {
    %c0_i32 = arith.constant 0 : i32
    %0 = arith.cmpi eq, %arg2, %c0_i32 : i32
    %1 = arith.extui %0 : i1 to i32
    %c0_i32_0 = arith.constant 0 : i32
    %2 = arith.cmpi ne, %1, %c0_i32_0 : i32
    scf.if %2 {
      %cst_10 = arith.constant 0.000000e+00 : f32
      %12 = vector.broadcast %cst_10 : f32 to vector<16x96xf32>
      %c0_11 = arith.constant 0 : index
      %c0_12 = arith.constant 0 : index
      %13 = vector.load %arg7[%c0_11, %c0_12] : memref<16x96xf32, #tpu.memory_space<vmem>>, vector<16x96xf32>
      tpu.vector_store %arg7[%c0_11, %c0_12], %12 {strides = array<i32>} : memref<16x96xf32, #tpu.memory_space<vmem>>, vector<16x96xf32>,
    } else {
    }
    %c0 = arith.constant 0 : index
    %c0_1 = arith.constant 0 : index
    %3 = vector.load %arg7[%c0, %c0_1] : memref<16x96xf32, #tpu.memory_space<vmem>>, vector<16x96xf32>
    %c0_2 = arith.constant 0 : index
    %c0_3 = arith.constant 0 : index
    %4 = vector.load %arg3[%c0_2, %c0_3] : memref<16x32xf32, #tpu.memory_space<vmem>>, vector<16x32xf32>
    %c0_4 = arith.constant 0 : index
    %c0_5 = arith.constant 0 : index
    %5 = vector.load %arg4[%c0_4, %c0_5] : memref<96x32xf32, #tpu.memory_space<vmem>>, vector<96x32xf32>
    %cst = arith.constant dense<0.000000e+00> : vector<16x96xf32>
    %6 = tpu.matmul %4, %5, %cst {dimension_numbers = #tpu.dot_dimension_numbers<[1], [1], [0], [0], [0, 0, 1, 0], [], []>} : vector<16x32xf32>, vector<96x32xf32>, vector<16x96xf32> -> vector<16x96xf32>
    %7 = arith.addf %3, %6 : vector<16x96xf32>
    %c0_6 = arith.constant 0 : index
    %c0_7 = arith.constant 0 : index
    %8 = vector.load %arg7[%c0_6, %c0_7] : memref<16x96xf32, #tpu.memory_space<vmem>>, vector<16x96xf32>
    tpu.vector_store %arg7[%c0_6, %c0_7], %7 {strides = array<i32>} : memref<16x96xf32, #tpu.memory_space<vmem>>, vector<16x96xf32>,
    %c0_i32_8 = arith.constant 0 : i32
    %9 = arith.cmpi eq, %arg2, %c0_i32_8 : i32
    %10 = arith.extui %9 : i1 to i32
    %c0_i32_9 = arith.constant 0 : i32
    %11 = arith.cmpi ne, %10, %c0_i32_9 : i32
    scf.if %11 {
      %c0_10 = arith.constant 0 : index
      %c0_11 = arith.constant 0 : index
      %12 = vector.load %arg7[%c0_10, %c0_11] : memref<16x96xf32, #tpu.memory_space<vmem>>, vector<16x96xf32>
      %c0_12 = arith.constant 0 : index
      %c0_13 = arith.constant 0 : index
      %13 = vector.load %arg5[%c0_12, %c0_13] : memref<1x96xf32, #tpu.memory_space<vmem>>, vector<1x96xf32>
      %14 = vector.broadcast %13 : vector<1x96xf32> to vector<16x96xf32>
      %15 = arith.addf %12, %14 : vector<16x96xf32>
      %c0_14 = arith.constant 0 : index
      %c0_15 = arith.constant 0 : index
      %16 = vector.load %arg6[%c0_14, %c0_15] : memref<16x96xf32, #tpu.memory_space<vmem>>, vector<16x96xf32>
      tpu.vector_store %arg6[%c0_14, %c0_15], %15 {strides = array<i32>} : memref<16x96xf32, #tpu.memory_space<vmem>>, vector<16x96xf32>,
    } else {
    }
    return
  }
  func.func @transform_0(%arg0: i32, %arg1: i32, %arg2: i32) -> (i32, i32) {
    %c0_i32 = arith.constant 0 : i32
    return %arg0, %arg2 : i32, i32
  }
  func.func @transform_1(%arg0: i32, %arg1: i32, %arg2: i32) -> (i32, i32) {
    %c0_i32 = arith.constant 0 : i32
    return %arg1, %arg2 : i32, i32
  }
  func.func @transform_2(%arg0: i32, %arg1: i32, %arg2: i32) -> (i32, i32) {
    %c0_i32 = arith.constant 0 : i32
    %c0_i32_0 = arith.constant 0 : i32
    return %c0_i32, %arg1 : i32, i32
  }
  func.func @transform_3(%arg0: i32, %arg1: i32, %arg2: i32) -> (i32, i32) {
    %c0_i32 = arith.constant 0 : i32
    return %arg0, %arg1 : i32, i32
  }
}

</mosaic_0001>

<bundles_post_ra>
// kernel: tpu_custom_call.1
= control target key start
LH: loop header
LB: loop body
LE: loop exit
PB: predicated region body
PF: predicated region fallthrough
CT: control target
= control target key end

     0   :  { %vm38_vm0 = vcmask 261120   ;;  %vm19_vm1 = vcmask 785408   ;;  %v275_v2 = vmov 0.0   ;;  %s379_s0 = inlined_call_operand.vmem [shape: f32[16,32], index: 0, kind: input, shape index: {}]   ;;  %s380_s1 = inlined_call_operand.vmem [shape: f32[96,32], index: 1, kind: input, shape index: {}]   ;;  %s381_s2 = inlined_call_operand.vmem [shape: f32[1,96], index: 2, kind: input, shape index: {}]   ;;  %s382_s3 = inlined_call_operand.hbm [shape: f32[16,96], index: 3, kind: output, shape index: {}]  }
   0x1   :  { %v37_v0 = vld [vmem:[%s380_s1 + $0x58] sm:$0xff]  ;;  %v36_v1 = vld [vmem:[%s380_s1 + $0x50] sm:$0xff]  ;;  %21 = vst.msk [vmem:[#allocation2 + $0x8] sm:$0xff] %vm19_vm1, %v275_v2  ;;  %20 = vst.msk [vmem:[#allocation2] sm:$0xff] %vm19_vm1, %v275_v2 }
   0x2   :  { %222 = vmatprep.subr.msk.mxu0 %vm38_vm0, %v37_v0  ;;  %v35_v3 = vld [vmem:[%s380_s1 + $0x48] sm:$0xff]  ;;  %v24_v4 = vld [vmem:[%s379_s0] sm:$0xff] }
   0x3   :  { %223 = vmatpush3.xpose.msk.msra.mxu0 %vm38_vm0, %v37_v0 }
   0x4   :  { %224 = vmatprep.subr.msk.mxu0 %vm38_vm0, %v36_v1 }
   0x5   :  { %8 = vsyncpa [#allocation4], 0  ;;  %246 = vmatprep.mubr.msk.f32.mxu0 %vm38_vm0, %v24_v4  ;;  %v34_v5 = vld [vmem:[%s380_s1 + $0x40] sm:$0xff]  ;;  %v33_v6 = vld [vmem:[%s380_s1 + $0x38] sm:$0xff]  ;;  %s276_s14 = smov [#allocation3]  }
   0x6   :  { %v32_v7 = vld [vmem:[%s380_s1 + $0x30] sm:$0xff]  ;;  %v31_v8 = vld [vmem:[%s380_s1 + $0x28] sm:$0xff]  ;;  %v30_v9 = vld [vmem:[%s380_s1 + $0x20] sm:$0xff]  ;;  %s182_s15 = sshll.u32 %s276_s14, 4  ;;  %s183_s15 = int_to_ptr.vmem [resolvable:$true] %s182_s15 }
   0x7   :  { %225 = vmatpush3.xpose.msk.msra.mxu0 %vm38_vm0, %v36_v1  ;;  %v29_v10 = vld [vmem:[%s380_s1 + $0x18] sm:$0xff]  ;;  %v28_v11 = vld [vmem:[%s380_s1 + $0x10] sm:$0xff]  ;;  %v27_v12 = vld [vmem:[%s380_s1 + $0x8] sm:$0xff]  ;;  %p258_p1 = scmp.lt.s32.totalorder %s183_s15, %s183_s15 }
   0x8   :  { %226 = vmatprep.subr.msk.mxu0 %vm38_vm0, %v35_v3  ;;  %v26_v13 = vld [vmem:[%s380_s1] sm:$0xff]  ;;  %v25_v14 = vld [vmem:[%s379_s0 + $0x8] sm:$0xff]  ;;  %s253_s0 = scalar_lea.vmem %s183_s15, 256 }
   0x9   :  { %v23_v15 = vld [vmem:[#allocation2 + $0x8] sm:$0xff]  ;;  %v22_v17 = vld [vmem:[#allocation2] sm:$0xff]  ;;  %p254_p0 = scmp.ne.s32.totalorder %s183_s15, %s253_s0  ;;  %p259_p2 = scmp.lt.s32.totalorder %s253_s0, %s253_s0 }
   0xa   :  { %v207_v21 = vld [vmem:[%s381_s2] ss:$0 sm:$0xff] }
   0xb   :  { %227 = vmatpush3.xpose.msk.msra.mxu0 %vm38_vm0, %v35_v3  ;;  %p260_p3 = por %p259_p2, %p258_p1 }
   0xc   :  { %228 = vmatprep.subr.msk.mxu0 %vm38_vm0, %v34_v5 }
   0xd   :  { %p261_p4 = pnand %p260_p3, %p254_p0 }
   0xf   :  { %229 = vmatpush3.xpose.msk.msra.mxu0 %vm38_vm0, %v34_v5 }
  0x10   :  { %230 = vmatprep.subr.msk.mxu0 %vm38_vm0, %v33_v6 }
  0x13   :  { %231 = vmatpush3.xpose.msk.msra.mxu0 %vm38_vm0, %v33_v6 }
  0x14   :  { %232 = vmatprep.subr.msk.mxu0 %vm38_vm0, %v32_v7 }
  0x17   :  { %233 = vmatpush3.xpose.msk.msra.mxu0 %vm38_vm0, %v32_v7 }
  0x18   :  { %234 = vmatprep.subr.msk.mxu0 %vm38_vm0, %v31_v8 }
  0x1b   :  { %235 = vmatpush3.xpose.msk.msra.mxu0 %vm38_vm0, %v31_v8 }
  0x1c   :  { %236 = vmatprep.subr.msk.mxu0 %vm38_vm0, %v30_v9 }
  0x1f   :  { %237 = vmatpush3.xpose.msk.msra.mxu0 %vm38_vm0, %v30_v9 }
  0x20   :  { %238 = vmatprep.subr.msk.mxu0 %vm38_vm0, %v29_v10 }
  0x23   :  { %239 = vmatpush3.xpose.msk.msra.mxu0 %vm38_vm0, %v29_v10 }
  0x24   :  { %240 = vmatprep.subr.msk.mxu0 %vm38_vm0, %v28_v11 }
  0x27   :  { %241 = vmatpush3.xpose.msk.msra.mxu0 %vm38_vm0, %v28_v11 }
  0x28   :  { %242 = vmatprep.subr.msk.mxu0 %vm38_vm0, %v27_v12 }
  0x2b   :  { %243 = vmatpush3.xpose.msk.msra.mxu0 %vm38_vm0, %v27_v12 }
  0x2c   :  { %244 = vmatprep.subr.msk.mxu0 %vm38_vm0, %v26_v13 }
  0x2f   :  { %245 = vmatpush3.xpose.msk.msra.mxu0 %vm38_vm0, %v26_v13 }
  0x32   :  { %247 = vmatmul.mubr.msk.f32.vlgmr.msra.gmra.mxu0 %vm38_vm0, %v25_v14 }
  0xf2   :  { %v248_v16 = vpop.f32.mrf.mxu0 }
  0xf3   :  { %v157_v18 = vadd.f32 %v248_v16, %v23_v15 }
  0xf4   :  { %v147_v19 = vpop.f32.mrf.mxu0 }
  0xf5   :  { %160 = vst.msk [vmem:[#allocation2 + $0x8] sm:$0xff] %vm19_vm1, %v157_v18  ;;  %v156_v20 = vadd.f32 %v147_v19, %v22_v17 }
  0xf7   :  { %159 = vst.msk [vmem:[#allocation2] sm:$0xff] %vm19_vm1, %v156_v20 }
  0xfc   :  { %v165_v22 = vld [vmem:[#allocation2 + $0x8] sm:$0xff] }
  0xfd   :  { %v174_v23 = vadd.f32 %v207_v21, %v165_v22 }
  0xfe   :  { %v164_v24 = vld [vmem:[#allocation2] sm:$0xff] }
  0xff   :  { %v173_v25 = vadd.f32 %v207_v21, %v164_v24  ;;  %176 = vst.msk [vmem:[#allocation3 + $0x8] sm:$0xff] %vm19_vm1, %v174_v23 }
 0x101   :  { %175 = vst.msk [vmem:[#allocation3] sm:$0xff] %vm19_vm1, %v173_v25 }
 0x102   :  { %264 = shalt.err (!%p261_p4)
}
 0x103   :  { %s277_s16 = smov 128   ;;  %s278_s2 = smov 8  }
 0x104   :  { %188 = dma.vmem_to_hbm [thread:$0]  %s183_s15, 256, %s382_s3, [#allocation4], %s277_s16, %s277_s16, %s278_s2  }
 0x105   :  { %273 = dma.done.wait [#allocation4], 256  }
 0x106   :  { %274 = vsyncadd [#allocation4], 4294967040 }
 0x107   :  { %192 = vsyncpa [#allocation4], 1 }

</bundles_post_ra>
